<compile_context>
chip_gen: v7x
topology: tpu7x:2x2x1
jax: 0.10.0
libtpu: 0.0.40
codegen_flags: <defaults>
</compile_context>

<pallas_src>
import jax
import jax.numpy as jnp
from jax.experimental import pallas as pl
from jax.experimental.pallas import tpu as pltpu


def _softmax_axis0(x):
    m = jnp.max(x, axis=0, keepdims=True)
    e = jnp.exp(x - m)
    return e / jnp.sum(e, axis=0, keepdims=True)


def eagcn_kernel(seg_ref, sigma_ref, sigTs_ref, rowfac_ref, ucol_ref,
                 wg_ref, bg_ref, out_ref, segsim_ref):
    B, S, L = sigma_ref.shape

    # per-batch similarity + seg @ similarity, written lane-dense into scratch
    for b in range(B):                       # B is small & static -> unrolled
        sigma = sigma_ref[b]                 # (S, L)
        sigT_scaled = sigTs_ref[b]           # (L, S), rows pre-scaled by edge_mm
        rf = rowfac_ref[b]                   # (2, L)
        v_row = rf[0:1, :]                   # (1, L)  chatt · theta_T
        ss_row = rf[1:2, :]                  # (1, L)  seg_ss
        u_col = ucol_ref[b * L:(b + 1) * L, :]   # (L, 1)  theta · chatt

        # channel similarity: rank-1 outer product (VPU only, no MXU)
        logits_c = u_col * v_row                                          # (L, L)
        # spatial similarity: (edge_mm ⊙ sigma_T) @ sigma, scaled by seg_ss cols
        logits_s = jnp.dot(sigT_scaled, sigma,
                           preferred_element_type=jnp.float32) * ss_row   # (L, L)
        similarity = _softmax_axis0(logits_c) + _softmax_axis0(logits_s)

        seg_b = seg_ref[:, b * L:(b + 1) * L]                             # (C, L)
        segsim_ref[:, b * L:(b + 1) * L] = jnp.dot(
            seg_b, similarity, preferred_element_type=jnp.float32)

    # one wide GCN 1x1 conv over all B*L lanes + ReLU + fused double residual
    gcn = jnp.dot(wg_ref[...], segsim_ref[...],
                  preferred_element_type=jnp.float32) + bg_ref[...]
    out_ref[...] = (jnp.maximum(gcn, 0.0) + 2.0 * seg_ref[...]).astype(out_ref.dtype)


def _largest_divisor(n, cap):
    for b in range(min(n, cap), 0, -1):
        if n % b == 0:
            return b
    return 1


def eagcn_forward(params, seg_ori, edge_ori, mids, batch_block=8):
    n, C, H, W = seg_ori.shape
    L = H * W
    assert L == mids * mids
    S = params['W1'].shape[0]
    B = _largest_divisor(n, batch_block)     # batches per grid step

    seg = seg_ori.reshape(n, C, L).astype(jnp.float32)
    edge = edge_ori.reshape(n, C, L).astype(jnp.float32)

    # ---- cheap glue (1x1 convs, pools, mlp, raw .view() reshapes) in plain JAX ----
    seg_s = jnp.einsum('sc,ncl->nsl', params['W1'], seg) + params['b1'][None, :, None]
    theta_T = seg_s                                   # (n, S, L)
    theta = seg_s.reshape(n, L, S)                    # torch .view(n, -1, num_s)

    pooled = jnp.mean(seg, axis=2)                    # AdaptiveAvgPool2d(1)
    chatt = jax.nn.relu(pooled @ params['Wmlp'].T + params['bmlp'])     # (n, S)
    # rank-1 structure of diag_channel_att = chatt ⊗ chatt
    u = jnp.einsum('nls,ns->nl', theta, chatt)        # (n, L) row-index factor
    v = jnp.einsum('ns,nsl->nl', chatt, theta_T)      # (n, L) column-index factor

    seg_c = jnp.einsum('sc,ncl->nsl', params['W11'], seg) + params['b11'][None, :, None]
    sigma = seg_c                                     # (n, S, L)
    sigma_T = seg_c.reshape(n, L, S)                  # raw .view reinterp

    maxpool_s = jnp.max(seg, axis=1)                  # (n, L)
    edge_m_pool = jnp.max(seg + edge, axis=1)         # (n, L)
    seg_ss = params['w2'] * maxpool_s + params['b2']  # (n, L) column factor
    edge_mm = params['w3'] * edge_m_pool + params['b3']  # (n, L) row factor
    # fold the row factor into sigma_T so the kernel never needs an (L,1) edge input
    sigma_T_scaled = sigma_T * edge_mm[:, :, None]    # (n, L, S)

    rowfac = jnp.stack([v, seg_ss], axis=1)           # (n, 2, L)
    ucol = u.reshape(n * L, 1)                        # (n*L, 1)

    seg2d = seg.transpose(1, 0, 2).reshape(C, n * L)  # lane-dense activations
    wg = params['Wg']                                 # (C, C)
    bg = params['bg'].reshape(C, 1)                   # (C, 1)

    out2d = pl.pallas_call(
        eagcn_kernel,
        out_shape=jax.ShapeDtypeStruct((C, n * L), jnp.float32),
        grid_spec=pltpu.PrefetchScalarGridSpec(
            num_scalar_prefetch=0,
            grid=(n // B,),
            in_specs=[
                pl.BlockSpec((C, B * L), lambda g: (0, g)),      # seg2d (lane-dense)
                pl.BlockSpec((B, S, L), lambda g: (g, 0, 0)),    # sigma
                pl.BlockSpec((B, L, S), lambda g: (g, 0, 0)),    # sigma_T * edge_mm
                pl.BlockSpec((B, 2, L), lambda g: (g, 0, 0)),    # [v, seg_ss]
                pl.BlockSpec((B * L, 1), lambda g: (g, 0)),      # u column
                pl.BlockSpec((C, C), lambda g: (0, 0)),          # Wg
                pl.BlockSpec((C, 1), lambda g: (0, 0)),          # bg
            ],
            out_specs=pl.BlockSpec((C, B * L), lambda g: (0, g)),
            scratch_shapes=[pltpu.VMEM((C, B * L), jnp.float32)],
        ),
        compiler_params=pltpu.CompilerParams(
            dimension_semantics=("parallel",)),
    )(seg2d, sigma, sigma_T_scaled, rowfac, ucol, wg, bg)

    out = out2d.reshape(C, n, L).transpose(1, 0, 2)
    return out.reshape(n, C, mids, mids)


def eagcn_reference(params, seg_ori, edge_ori, mids):
    # pure-JAX mirror of the PyTorch forward, used only for a correctness check
    n, C, H, W = seg_ori.shape
    L = H * W
    S = params['W1'].shape[0]
    seg = seg_ori.reshape(n, C, L)
    edge = edge_ori.reshape(n, C, L)
    seg_s = jnp.einsum('sc,ncl->nsl', params['W1'], seg) + params['b1'][None, :, None]
    theta_T = seg_s
    theta = seg_s.reshape(n, L, S)
    pooled = jnp.mean(seg, axis=2)
    chatt = jax.nn.relu(pooled @ params['Wmlp'].T + params['bmlp'])
    diag_catt = jnp.einsum('ns,nt->nst', chatt, chatt)
    sim_c = jnp.einsum('nls,nst->nlt', theta, diag_catt)
    sim_c = jnp.einsum('nls,nsm->nlm', sim_c, theta_T)
    sim_c = jax.nn.softmax(sim_c, axis=1)
    seg_c = jnp.einsum('sc,ncl->nsl', params['W11'], seg) + params['b11'][None, :, None]
    sigma = seg_c
    sigma_T = seg_c.reshape(n, L, S)
    sigma_out = jnp.einsum('nls,nsm->nlm', sigma_T, sigma)
    maxpool_s = jnp.max(seg, axis=1)
    edge_m_pool = jnp.max(seg + edge, axis=1)
    seg_ss = (params['w2'] * maxpool_s + params['b2'])[:, None, :]
    edge_mm = (params['w3'] * edge_m_pool + params['b3'])[:, :, None]
    sim_s = jax.nn.softmax(edge_mm * seg_ss * sigma_out, axis=1)
    similarity = sim_c + sim_s
    seg_similar = jnp.einsum('ncl,nlm->ncm', seg, similarity)
    gcn_out = jax.nn.relu(
        jnp.einsum('oc,ncl->nol', params['Wg'], seg_similar) + params['bg'][None, :, None])
    seg_gcn = gcn_out + seg
    return (seg_gcn + seg).reshape(n, C, mids, mids)


def init_params(key, num_in, plane_mid):
    # deterministic synthetic weights (PyTorch-style uniform(-1/sqrt(fan_in), 1/sqrt(fan_in)))
    C, S = num_in, plane_mid
    ks = jax.random.split(key, 12)

    def u(k, shape, fan_in):
        bound = 1.0 / float(fan_in) ** 0.5
        return jax.random.uniform(k, shape, jnp.float32, -bound, bound)

    return dict(
        W1=u(ks[0], (S, C), C), b1=u(ks[1], (S,), C),        # conv_s1
        W11=u(ks[2], (S, C), C), b11=u(ks[3], (S,), C),      # conv_s11
        w2=u(ks[4], (), 1), b2=u(ks[5], (), 1),              # conv_s2 (1x1, 1ch)
        w3=u(ks[6], (), 1), b3=u(ks[7], (), 1),              # conv_s3 (1x1, 1ch)
        Wmlp=u(ks[8], (S, C), C), bmlp=u(ks[9], (S,), C),    # mlp
        Wg=u(ks[10], (C, C), C), bg=u(ks[11], (C,), C),      # gcn.conv2
    )


if __name__ == "__main__":
    key = jax.random.PRNGKey(0)
    k_seg, k_edge, k_par = jax.random.split(key, 3)

    num_in, plane_mid, mids = 8, 4, 8          # C=8, S=4, L=mids*mids=64
    n = 2
    H = W = mids                               # forward requires H*W == mids*mids

    seg_ori = jax.random.normal(k_seg, (n, num_in, H, W), jnp.float32)
    edge_ori = jax.random.normal(k_edge, (n, num_in, H, W), jnp.float32)
    params = init_params(k_par, num_in, plane_mid)

    out = eagcn_forward(params, seg_ori, edge_ori, mids)
    out = jax.block_until_ready(out)

    ref = eagcn_reference(params, seg_ori, edge_ori, mids)
    assert out.shape == (n, num_in, mids, mids)
    assert jnp.allclose(out, ref, rtol=2e-2, atol=2e-2), float(jnp.max(jnp.abs(out - ref)))
    print("KERNEL_OK")
</pallas_src>

<mosaic_0001>
module attributes {stable_mosaic.version = 11 : i64} {
  func.func @eagcn_kernel(%arg0: i32, %arg1: memref<8x128xf32, #tpu.memory_space<vmem>>, %arg2: memref<2x4x64xf32, #tpu.memory_space<vmem>>, %arg3: memref<2x64x4xf32, #tpu.memory_space<vmem>>, %arg4: memref<2x2x64xf32, #tpu.memory_space<vmem>>, %arg5: memref<128x1xf32, #tpu.memory_space<vmem>>, %arg6: memref<8x8xf32, #tpu.memory_space<vmem>>, %arg7: memref<8x1xf32, #tpu.memory_space<vmem>>, %arg8: memref<8x128xf32, #tpu.memory_space<vmem>>, %arg9: memref<8x128xf32, #tpu.memory_space<vmem>>) attributes {dimension_semantics = [#tpu.dimension_semantics<parallel>], iteration_bounds = array<i64: 1>, scalar_prefetch = 0 : i64, scratch_operands = 1 : i64, tpu.core_type = #tpu.core_type<tc>, window_params = [{transform_indices = @transform_0, window_bounds = array<i64: 8, 128>}, {transform_indices = @transform_1, window_bounds = array<i64: 2, 4, 64>}, {transform_indices = @transform_2, window_bounds = array<i64: 2, 64, 4>}, {transform_indices = @transform_3, window_bounds = array<i64: 2, 2, 64>}, {transform_indices = @transform_4, window_bounds = array<i64: 128, 1>}, {pipeline_mode = #tpu.pipeline_mode<synchronous>, transform_indices = @transform_5, window_bounds = array<i64: 8, 8>}, {pipeline_mode = #tpu.pipeline_mode<synchronous>, transform_indices = @transform_6, window_bounds = array<i64: 8, 1>}, {transform_indices = @transform_7, window_bounds = array<i64: 8, 128>}]} {
    %c0 = arith.constant 0 : index
    %c0_0 = arith.constant 0 : index
    %c0_1 = arith.constant 0 : index
    %0 = vector.load %arg2[%c0, %c0_0, %c0_1] : memref<2x4x64xf32, #tpu.memory_space<vmem>>, vector<1x4x64xf32>
    %1 = vector.shape_cast %0 : vector<1x4x64xf32> to vector<4x64xf32>
    %c0_2 = arith.constant 0 : index
    %c0_3 = arith.constant 0 : index
    %c0_4 = arith.constant 0 : index
    %2 = vector.load %arg3[%c0_2, %c0_3, %c0_4] : memref<2x64x4xf32, #tpu.memory_space<vmem>>, vector<1x64x4xf32>
    %3 = vector.shape_cast %2 : vector<1x64x4xf32> to vector<64x4xf32>
    %c0_5 = arith.constant 0 : index
    %c0_6 = arith.constant 0 : index
    %c0_7 = arith.constant 0 : index
    %4 = vector.load %arg4[%c0_5, %c0_6, %c0_7] : memref<2x2x64xf32, #tpu.memory_space<vmem>>, vector<1x2x64xf32>
    %5 = vector.shape_cast %4 : vector<1x2x64xf32> to vector<2x64xf32>
    %6 = vector.extract_strided_slice %5 {offsets = [0, 0], sizes = [1, 64], strides = [1, 1]} : vector<2x64xf32> to vector<1x64xf32>
    %7 = vector.extract_strided_slice %5 {offsets = [1, 0], sizes = [1, 64], strides = [1, 1]} : vector<2x64xf32> to vector<1x64xf32>
    %c0_8 = arith.constant 0 : index
    %c0_9 = arith.constant 0 : index
    %8 = vector.load %arg5[%c0_8, %c0_9] : memref<128x1xf32, #tpu.memory_space<vmem>>, vector<64x1xf32>
    %9 = vector.broadcast %8 : vector<64x1xf32> to vector<64x64xf32>
    %10 = vector.broadcast %6 : vector<1x64xf32> to vector<64x64xf32>
    %11 = arith.mulf %9, %10 : vector<64x64xf32>
    %cst = arith.constant dense<0.000000e+00> : vector<64x64xf32>
    %12 = tpu.matmul %3, %1, %cst {dimension_numbers = #tpu.dot_dimension_numbers<[1], [0], [0], [1], [0, 0, 1, 1], [], []>} : vector<64x4xf32>, vector<4x64xf32>, vector<64x64xf32> -> vector<64x64xf32>
    %13 = vector.broadcast %7 : vector<1x64xf32> to vector<64x64xf32>
    %14 = arith.mulf %12, %13 : vector<64x64xf32>
    %cst_10 = arith.constant dense<0xFF800000> : vector<64xf32>
    %15 = vector.multi_reduction <maximumf>, %11, %cst_10 [0] : vector<64x64xf32> to vector<64xf32>
    %16 = vector.shape_cast %15 : vector<64xf32> to vector<1x64xf32>
    %17 = vector.broadcast %16 : vector<1x64xf32> to vector<64x64xf32>
    %18 = arith.subf %11, %17 : vector<64x64xf32>
    %19 = math.exp %18 : vector<64x64xf32>
    %cst_11 = arith.constant dense<0.000000e+00> : vector<64xf32>
    %20 = vector.multi_reduction <add>, %19, %cst_11 [0] : vector<64x64xf32> to vector<64xf32>
    %21 = vector.shape_cast %20 : vector<64xf32> to vector<1x64xf32>
    %22 = vector.broadcast %21 : vector<1x64xf32> to vector<64x64xf32>
    %23 = arith.divf %19, %22 : vector<64x64xf32>
    %cst_12 = arith.constant dense<0xFF800000> : vector<64xf32>
    %24 = vector.multi_reduction <maximumf>, %14, %cst_12 [0] : vector<64x64xf32> to vector<64xf32>
    %25 = vector.shape_cast %24 : vector<64xf32> to vector<1x64xf32>
    %26 = vector.broadcast %25 : vector<1x64xf32> to vector<64x64xf32>
    %27 = arith.subf %14, %26 : vector<64x64xf32>
    %28 = math.exp %27 : vector<64x64xf32>
    %cst_13 = arith.constant dense<0.000000e+00> : vector<64xf32>
    %29 = vector.multi_reduction <add>, %28, %cst_13 [0] : vector<64x64xf32> to vector<64xf32>
    %30 = vector.shape_cast %29 : vector<64xf32> to vector<1x64xf32>
    %31 = vector.broadcast %30 : vector<1x64xf32> to vector<64x64xf32>
    %32 = arith.divf %28, %31 : vector<64x64xf32>
    %33 = arith.addf %23, %32 : vector<64x64xf32>
    %c0_14 = arith.constant 0 : index
    %c0_15 = arith.constant 0 : index
    %34 = vector.load %arg1[%c0_14, %c0_15] : memref<8x128xf32, #tpu.memory_space<vmem>>, vector<8x64xf32>
    %cst_16 = arith.constant dense<0.000000e+00> : vector<8x64xf32>
    %35 = tpu.matmul %34, %33, %cst_16 {dimension_numbers = #tpu.dot_dimension_numbers<[1], [0], [0], [1], [0, 0, 1, 1], [], []>} : vector<8x64xf32>, vector<64x64xf32>, vector<8x64xf32> -> vector<8x64xf32>
    %c0_17 = arith.constant 0 : index
    %c0_18 = arith.constant 0 : index
    %36 = vector.load %arg9[%c0_17, %c0_18] : memref<8x128xf32, #tpu.memory_space<vmem>>, vector<8x64xf32>
    tpu.vector_store %arg9[%c0_17, %c0_18], %35 {strides = array<i32>} : memref<8x128xf32, #tpu.memory_space<vmem>>, vector<8x64xf32>,
    %c1 = arith.constant 1 : index
    %c0_19 = arith.constant 0 : index
    %c0_20 = arith.constant 0 : index
    %37 = vector.load %arg2[%c1, %c0_19, %c0_20] : memref<2x4x64xf32, #tpu.memory_space<vmem>>, vector<1x4x64xf32>
    %38 = vector.shape_cast %37 : vector<1x4x64xf32> to vector<4x64xf32>
    %c1_21 = arith.constant 1 : index
    %c0_22 = arith.constant 0 : index
    %c0_23 = arith.constant 0 : index
    %39 = vector.load %arg3[%c1_21, %c0_22, %c0_23] : memref<2x64x4xf32, #tpu.memory_space<vmem>>, vector<1x64x4xf32>
    %40 = vector.shape_cast %39 : vector<1x64x4xf32> to vector<64x4xf32>
    %c1_24 = arith.constant 1 : index
    %c0_25 = arith.constant 0 : index
    %c0_26 = arith.constant 0 : index
    %41 = vector.load %arg4[%c1_24, %c0_25, %c0_26] : memref<2x2x64xf32, #tpu.memory_space<vmem>>, vector<1x2x64xf32>
    %42 = vector.shape_cast %41 : vector<1x2x64xf32> to vector<2x64xf32>
    %43 = vector.extract_strided_slice %42 {offsets = [0, 0], sizes = [1, 64], strides = [1, 1]} : vector<2x64xf32> to vector<1x64xf32>
    %44 = vector.extract_strided_slice %42 {offsets = [1, 0], sizes = [1, 64], strides = [1, 1]} : vector<2x64xf32> to vector<1x64xf32>
    %c64 = arith.constant 64 : index
    %c0_27 = arith.constant 0 : index
    %45 = vector.load %arg5[%c64, %c0_27] : memref<128x1xf32, #tpu.memory_space<vmem>>, vector<64x1xf32>
    %46 = vector.broadcast %45 : vector<64x1xf32> to vector<64x64xf32>
    %47 = vector.broadcast %43 : vector<1x64xf32> to vector<64x64xf32>
    %48 = arith.mulf %46, %47 : vector<64x64xf32>
    %cst_28 = arith.constant dense<0.000000e+00> : vector<64x64xf32>
    %49 = tpu.matmul %40, %38, %cst_28 {dimension_numbers = #tpu.dot_dimension_numbers<[1], [0], [0], [1], [0, 0, 1, 1], [], []>} : vector<64x4xf32>, vector<4x64xf32>, vector<64x64xf32> -> vector<64x64xf32>
    %50 = vector.broadcast %44 : vector<1x64xf32> to vector<64x64xf32>
    %51 = arith.mulf %49, %50 : vector<64x64xf32>
    %cst_29 = arith.constant dense<0xFF800000> : vector<64xf32>
    %52 = vector.multi_reduction <maximumf>, %48, %cst_29 [0] : vector<64x64xf32> to vector<64xf32>
    %53 = vector.shape_cast %52 : vector<64xf32> to vector<1x64xf32>
    %54 = vector.broadcast %53 : vector<1x64xf32> to vector<64x64xf32>
    %55 = arith.subf %48, %54 : vector<64x64xf32>
    %56 = math.exp %55 : vector<64x64xf32>
    %cst_30 = arith.constant dense<0.000000e+00> : vector<64xf32>
    %57 = vector.multi_reduction <add>, %56, %cst_30 [0] : vector<64x64xf32> to vector<64xf32>
    %58 = vector.shape_cast %57 : vector<64xf32> to vector<1x64xf32>
    %59 = vector.broadcast %58 : vector<1x64xf32> to vector<64x64xf32>
    %60 = arith.divf %56, %59 : vector<64x64xf32>
    %cst_31 = arith.constant dense<0xFF800000> : vector<64xf32>
    %61 = vector.multi_reduction <maximumf>, %51, %cst_31 [0] : vector<64x64xf32> to vector<64xf32>
    %62 = vector.shape_cast %61 : vector<64xf32> to vector<1x64xf32>
    %63 = vector.broadcast %62 : vector<1x64xf32> to vector<64x64xf32>
    %64 = arith.subf %51, %63 : vector<64x64xf32>
    %65 = math.exp %64 : vector<64x64xf32>
    %cst_32 = arith.constant dense<0.000000e+00> : vector<64xf32>
    %66 = vector.multi_reduction <add>, %65, %cst_32 [0] : vector<64x64xf32> to vector<64xf32>
    %67 = vector.shape_cast %66 : vector<64xf32> to vector<1x64xf32>
    %68 = vector.broadcast %67 : vector<1x64xf32> to vector<64x64xf32>
    %69 = arith.divf %65, %68 : vector<64x64xf32>
    %70 = arith.addf %60, %69 : vector<64x64xf32>
    %c0_33 = arith.constant 0 : index
    %c64_34 = arith.constant 64 : index
    %71 = vector.load %arg1[%c0_33, %c64_34] : memref<8x128xf32, #tpu.memory_space<vmem>>, vector<8x64xf32>
    %cst_35 = arith.constant dense<0.000000e+00> : vector<8x64xf32>
    %72 = tpu.matmul %71, %70, %cst_35 {dimension_numbers = #tpu.dot_dimension_numbers<[1], [0], [0], [1], [0, 0, 1, 1], [], []>} : vector<8x64xf32>, vector<64x64xf32>, vector<8x64xf32> -> vector<8x64xf32>
    %c0_36 = arith.constant 0 : index
    %c64_37 = arith.constant 64 : index
    %73 = vector.load %arg9[%c0_36, %c64_37] : memref<8x128xf32, #tpu.memory_space<vmem>>, vector<8x64xf32>
    tpu.vector_store %arg9[%c0_36, %c64_37], %72 {strides = array<i32>} : memref<8x128xf32, #tpu.memory_space<vmem>>, vector<8x64xf32>,
    %c0_38 = arith.constant 0 : index
    %c0_39 = arith.constant 0 : index
    %74 = vector.load %arg6[%c0_38, %c0_39] : memref<8x8xf32, #tpu.memory_space<vmem>>, vector<8x8xf32>
    %c0_40 = arith.constant 0 : index
    %c0_41 = arith.constant 0 : index
    %75 = vector.load %arg9[%c0_40, %c0_41] : memref<8x128xf32, #tpu.memory_space<vmem>>, vector<8x128xf32>
    %cst_42 = arith.constant dense<0.000000e+00> : vector<8x128xf32>
    %76 = tpu.matmul %74, %75, %cst_42 {dimension_numbers = #tpu.dot_dimension_numbers<[1], [0], [0], [1], [0, 0, 1, 1], [], []>} : vector<8x8xf32>, vector<8x128xf32>, vector<8x128xf32> -> vector<8x128xf32>
    %c0_43 = arith.constant 0 : index
    %c0_44 = arith.constant 0 : index
    %77 = vector.load %arg7[%c0_43, %c0_44] : memref<8x1xf32, #tpu.memory_space<vmem>>, vector<8x1xf32>
    %78 = vector.broadcast %77 : vector<8x1xf32> to vector<8x128xf32>
    %79 = arith.addf %76, %78 : vector<8x128xf32>
    %cst_45 = arith.constant 0.000000e+00 : f32
    %80 = vector.broadcast %cst_45 : f32 to vector<8x128xf32>
    %81 = arith.maximumf %79, %80 : vector<8x128xf32>
    %c0_46 = arith.constant 0 : index
    %c0_47 = arith.constant 0 : index
    %82 = vector.load %arg1[%c0_46, %c0_47] : memref<8x128xf32, #tpu.memory_space<vmem>>, vector<8x128xf32>
    %cst_48 = arith.constant 2.000000e+00 : f32
    %83 = vector.broadcast %cst_48 : f32 to vector<8x128xf32>
    %84 = arith.mulf %83, %82 : vector<8x128xf32>
    %85 = arith.addf %81, %84 : vector<8x128xf32>
    %c0_49 = arith.constant 0 : index
    %c0_50 = arith.constant 0 : index
    %86 = vector.load %arg8[%c0_49, %c0_50] : memref<8x128xf32, #tpu.memory_space<vmem>>, vector<8x128xf32>
    tpu.vector_store %arg8[%c0_49, %c0_50], %85 {strides = array<i32>} : memref<8x128xf32, #tpu.memory_space<vmem>>, vector<8x128xf32>,
    return
  }
  func.func @transform_0(%arg0: i32) -> (i32, i32) {
    %c0_i32 = arith.constant 0 : i32
    %c0_i32_0 = arith.constant 0 : i32
    return %c0_i32, %arg0 : i32, i32
  }
  func.func @transform_1(%arg0: i32) -> (i32, i32, i32) {
    %c0_i32 = arith.constant 0 : i32
    %c0_i32_0 = arith.constant 0 : i32
    %c0_i32_1 = arith.constant 0 : i32
    return %arg0, %c0_i32, %c0_i32_0 : i32, i32, i32
  }
  func.func @transform_2(%arg0: i32) -> (i32, i32, i32) {
    %c0_i32 = arith.constant 0 : i32
    %c0_i32_0 = arith.constant 0 : i32
    %c0_i32_1 = arith.constant 0 : i32
    return %arg0, %c0_i32, %c0_i32_0 : i32, i32, i32
  }
  func.func @transform_3(%arg0: i32) -> (i32, i32, i32) {
    %c0_i32 = arith.constant 0 : i32
    %c0_i32_0 = arith.constant 0 : i32
    %c0_i32_1 = arith.constant 0 : i32
    return %arg0, %c0_i32, %c0_i32_0 : i32, i32, i32
  }
  func.func @transform_4(%arg0: i32) -> (i32, i32) {
    %c0_i32 = arith.constant 0 : i32
    %c0_i32_0 = arith.constant 0 : i32
    return %arg0, %c0_i32 : i32, i32
  }
  func.func @transform_5(%arg0: i32) -> (i32, i32) {
    %c0_i32 = arith.constant 0 : i32
    %c0_i32_0 = arith.constant 0 : i32
    %c0_i32_1 = arith.constant 0 : i32
    return %c0_i32, %c0_i32_0 : i32, i32
  }
  func.func @transform_6(%arg0: i32) -> (i32, i32) {
    %c0_i32 = arith.constant 0 : i32
    %c0_i32_0 = arith.constant 0 : i32
    %c0_i32_1 = arith.constant 0 : i32
    return %c0_i32, %c0_i32_0 : i32, i32
  }
  func.func @transform_7(%arg0: i32) -> (i32, i32) {
    %c0_i32 = arith.constant 0 : i32
    %c0_i32_0 = arith.constant 0 : i32
    return %c0_i32, %arg0 : i32, i32
  }
}

</mosaic_0001>

<bundles_post_ra>
// kernel: tpu_custom_call.1
= control target key start
LH: loop header
LB: loop body
LE: loop exit
PB: predicated region body
PF: predicated region fallthrough
CT: control target
= control target key end

     0   :  { %vm122_vm0 = vcmask 1043456   ;;  %vm97_vm1 = vcmask 31744   ;;  %v1303_v2 = vmov 0   ;;  %s1879_s0 = inlined_call_operand.vmem [shape: f32[8,128], index: 0, kind: input, shape index: {}]   ;;  %s1880_s1 = inlined_call_operand.vmem [shape: f32[2,4,64], index: 1, kind: input, shape index: {}]   ;;  %s1881_s2 = inlined_call_operand.vmem [shape: f32[2,64,4], index: 2, kind: input, shape index: {}]   ;;  %s1882_s3 = inlined_call_operand.vmem [shape: f32[2,2,64], index: 3, kind: input, shape index: {}]   ;;  %s1883_s4 = inlined_call_operand.vmem [shape: f32[128,1], index: 4, kind: input, shape index: {}]   ;;  %s1884_s5 = inlined_call_operand.vmem [shape: f32[8,8], index: 5, kind: input, shape index: {}]   ;;  %s1885_s6 = inlined_call_operand.vmem [shape: f32[8,1], index: 6, kind: input, shape index: {}]   ;;  %s1886_s7 = inlined_call_operand.hbm [shape: f32[8,128], index: 7, kind: output, shape index: {}]  }
   0x1   :  { %v27_v0 = vld [vmem:[%s1880_s1] sm:$0xf]  ;;  %1206 = vset.pattern.permute.xlu1 %v1303_v2  ;;  %v39_v3 = vld [vmem:[%s1883_s4 + $0x10] sm:$0xff]  ;;  %v29_v5 = vld [vmem:[%s1881_s2 + $0x8] sm:$0xff]  ;;  %1205 = vset.pattern.permute.xlu0 %v1303_v2 }
   0x2   :  { %v28_v1 = vld [vmem:[%s1881_s2] sm:$0xff]  ;;  %1104 = vmatprep.subr.msk.mxu0 %vm122_vm0, %v27_v0  ;;  %v30_v6 = vld [vmem:[%s1881_s2 + $0x10] sm:$0xff]  ;;  %57 = vperm.xlu1 %1206, %v39_v3   ;;  %v40_v7 = vld [vmem:[%s1883_s4 + $0x18] sm:$0xff] }
   0x3   :  { %v37_v4 = vld [vmem:[%s1883_s4] sm:$0xff]  ;;  %1105 = vmatpush3.msk.msra.mxu0 %vm122_vm0, %v27_v0  ;;  %1106 = vmatprep.mubr.msk.f32.mxu0 %vm97_vm1, %v28_v1  ;;  %v38_v8 = vld [vmem:[%s1883_s4 + $0x8] sm:$0xff]  ;;  %v31_v9 = vld [vmem:[%s1881_s2 + $0x18] sm:$0xff] }
   0x4   :  { %47 = vperm.xlu0 %1205, %v37_v4   ;;  %1107 = vmatmul.mubr.msk.f32.vlgmr.msra.gmra.mrb[0].mxu0 %vm97_vm1, %v29_v5  ;;  %v32_v10 = vld [vmem:[%s1881_s2 + $0x20] sm:$0xff]  ;;  %v42_v12 = vld [vmem:[%s1883_s4 + $0x28] sm:$0xff]  ;;  %v34_v15 = vld [vmem:[%s1881_s2 + $0x30] sm:$0xff] }
   0x5   :  { %1109 = vmatprep.mubr.msk.f32.mxu0 %vm97_vm1, %v30_v6  ;;  %v1045_v11 = vld [vmem:[%s1880_s1 + $0x4] sm:$0xf]  ;;  %v33_v14 = vld [vmem:[%s1881_s2 + $0x28] sm:$0xff]  ;;  %v44_v16 = vld [vmem:[%s1883_s4 + $0x38] sm:$0xff] }
   0x6   :  { %62 = vperm.xlu1 %1206, %v40_v7   ;;  %1137 = vmatprep.subr.msk.mxu0 %vm122_vm0, %v1045_v11  ;;  %v41_v13 = vld [vmem:[%s1883_s4 + $0x20] sm:$0xff] }
   0x7   :  { %1138 = vmatpush3.msk.msra.mxu0 %vm122_vm0, %v1045_v11 }
   0x8   :  { %52 = vperm.xlu0 %1205, %v38_v8   ;;  %1110 = vmatmul.mubr.msk.f32.gmra.mrb[2].mxu0 %vm97_vm1, %v31_v9 }
   0x9   :  { %1112 = vmatprep.mubr.msk.f32.mxu0 %vm97_vm1, %v32_v10 }
   0xa   :  { %72 = vperm.xlu1 %1206, %v42_v12  }
   0xc   :  { %67 = vperm.xlu0 %1205, %v41_v13   ;;  %1113 = vmatmul.mubr.msk.f32.gmra.mrb[4].mxu0 %vm97_vm1, %v33_v14 }
   0xd   :  { %12 = vsyncpa [#allocation4], 0  ;;  %1115 = vmatprep.mubr.msk.f32.mxu0 %vm97_vm1, %v34_v15  ;;  %v43_v17 = vld [vmem:[%s1883_s4 + $0x30] sm:$0xff]  ;;  %v35_v18 = vld [vmem:[%s1881_s2 + $0x38] sm:$0xff]  ;;  %s1304_s23 = smov 64   ;;  %v85_v41 = vlaneseq  ;;  %vm243_vm2 = vcmask 523264  }
   0xe   :  { %v1046_v19 = vld [vmem:[%s1881_s2 + $0x40] sm:$0xff]  ;;  %82 = vperm.xlu1 %1206, %v44_v16   ;;  %v491_v20 = vld [vmem:[%s1883_s4 + $0x48] sm:$0xff]  ;;  %v1048_v23 = vld [vmem:[%s1881_s2 + $0x50] sm:$0xff]  ;;  %vm1306_vm3 = vmmov 0   ;;  %vm932_vm4 = vcmask 1048064   ;;  %vm942_vm5 = vcmask 64512  }
   0xf   :  { %v490_v21 = vld [vmem:[%s1883_s4 + $0x40] sm:$0xff]  ;;  %v1047_v22 = vld [vmem:[%s1881_s2 + $0x48] sm:$0xff]  ;;  %v493_v24 = vld [vmem:[%s1883_s4 + $0x58] sm:$0xff]  ;;  %v1481_v44 = vshrl.u32 %v85_v41, 7  ;;  %s1308_s27 = smov [#allocation3]  }
  0x10   :  { %77 = vperm.xlu0 %1205, %v43_v17   ;;  %1116 = vmatmul.mubr.msk.f32.gmra.mrb[6].mxu0 %vm97_vm1, %v35_v18  ;;  %v492_v25 = vld [vmem:[%s1883_s4 + $0x50] sm:$0xff]  ;;  %v1049_v26 = vld [vmem:[%s1881_s2 + $0x58] sm:$0xff]  ;;  %v1050_v27 = vld [vmem:[%s1881_s2 + $0x60] sm:$0xff]  ;;  %s1027_s28 = sshll.u32 %s1308_s27, 4  ;;  %s1028_s28 = int_to_ptr.vmem [resolvable:$true] %s1027_s28 }
  0x11   :  { %1139 = vmatprep.mubr.msk.f32.mxu0 %vm97_vm1, %v1046_v19  ;;  %v495_v28 = vld [vmem:[%s1883_s4 + $0x68] sm:$0xff]  ;;  %v494_v29 = vld [vmem:[%s1883_s4 + $0x60] sm:$0xff]  ;;  %v1052_v31 = vld [vmem:[%s1881_s2 + $0x70] sm:$0xff]  ;;  %v87_v45 = vsub.s32 0, %v1481_v44  ;;  %s1279_s1 = scalar_lea.vmem %s1028_s28, 128  ;;  %p1284_p1 = scmp.lt.s32.totalorder %s1028_s28, %s1028_s28 }
  0x12   :  { %505 = vperm.xlu1 %1206, %v491_v20   ;;  %v1051_v30 = vld [vmem:[%s1881_s2 + $0x68] sm:$0xff]  ;;  %v497_v32 = vld [vmem:[%s1883_s4 + $0x78] sm:$0xff]  ;;  %v496_v33 = vld [vmem:[%s1883_s4 + $0x70] sm:$0xff]  ;;  %p1280_p0 = scmp.ne.s32.totalorder %s1028_s28, %s1279_s1  ;;  %p1285_p2 = scmp.lt.s32.totalorder %s1279_s1, %s1279_s1 }
  0x13   :  { %v1053_v34 = vld [vmem:[%s1881_s2 + $0x78] sm:$0xff]  ;;  %v1474_v35 = vld [vmem:[%s1879_s0] sm:$0xff] }
  0x14   :  { %500 = vperm.xlu0 %1205, %v490_v21   ;;  %1140 = vmatmul.mubr.msk.f32.vlgmr.msra.gmra.mrb[8].mxu0 %vm97_vm1, %v1047_v22  ;;  %v936_v36 = vld [vmem:[%s1885_s6] sm:$0xff]  ;;  %p1286_p3 = por %p1285_p2, %p1284_p1 }
  0x15   :  { %1142 = vmatprep.mubr.msk.f32.mxu0 %vm97_vm1, %v1048_v23  ;;  %v1487_v48 = vld [vmem:[%s1882_s3] sm:$0x3]  ;;  %v1525_v10 = vld [vmem:[%s1882_s3 + $0x2] sm:$0x3] }
  0x16   :  { %515 = vperm.xlu1 %1206, %v493_v24   ;;  %v88_v49 = vrot.slane %v1487_v48, %v87_v45  ;;  %v541_v15 = vrot.slane %v1525_v10, %v87_v45  ;;  %p1287_p4 = pnand %p1286_p3, %p1280_p0 }
  0x18   :  { %510 = vperm.xlu0 %1205, %v492_v25   ;;  %1143 = vmatmul.mubr.msk.f32.gmra.mrb[10].mxu0 %vm97_vm1, %v1049_v26 }
  0x19   :  { %1145 = vmatprep.mubr.msk.f32.mxu0 %vm97_vm1, %v1050_v27 }
  0x1a   :  { %525 = vperm.xlu1 %1206, %v495_v28  }
  0x1c   :  { %520 = vperm.xlu0 %1205, %v494_v29   ;;  %1146 = vmatmul.mubr.msk.f32.gmra.mrb[12].mxu0 %vm97_vm1, %v1051_v30 }
  0x1d   :  { %1148 = vmatprep.mubr.msk.f32.mxu0 %vm97_vm1, %v1052_v31 }
  0x1e   :  { %535 = vperm.xlu1 %1206, %v497_v32  }
  0x20   :  { %530 = vperm.xlu0 %1205, %v496_v33   ;;  %1149 = vmatmul.mubr.msk.f32.gmra.mrb[14].mxu0 %vm97_vm1, %v1053_v34 }
  0x24   :  { %854 = vrot.lane.b32.xlu0 %v1474_v35, %s1304_s23 }
  0x28   :  { %939 = vperm.xlu0 %1205, %v936_v36  }
  0x81   :  { %v58_v37 = vpop.permute.xlu1 %57 }
  0x82   :  { %v1490_v52 = vmul.f32 %v88_v49, %v58_v37 }
  0x83   :  { %v48_v38 = vpop.permute.xlu0 %47 }
  0x84   :  { %v1492_v53 = vmul.f32 %v88_v49, %v48_v38  ;;  %v246_v60 = vsel %vm243_vm2, %v1490_v52, -inf  ;;  %v1305_v38 = vmov 0.0|0.0  }
  0x85   :  { %v63_v39 = vpop.permute.xlu1 %62  ;;  %1175 = vmatprep.subr.bf16.mxu1 %v1305_v38 }
  0x86   :  { %v1494_v54 = vmul.f32 %v88_v49, %v63_v39  ;;  %v244_v61 = vsel %vm243_vm2, %v1492_v53, -inf }
  0x87   :  { %v53_v40 = vpop.permute.xlu0 %52 }
  0x88   :  { %v1496_v55 = vmul.f32 %v88_v49, %v53_v40  ;;  %v247_v62 = vsel %vm243_vm2, %v1494_v54, -inf }
  0x89   :  { %v73_v42 = vpop.permute.xlu1 %72 }
  0x8a   :  { %v1498_v56 = vmul.f32 %v88_v49, %v73_v42  ;;  %v245_v63 = vsel %vm243_vm2, %v1496_v55, -inf }
  0x8b   :  { %v68_v43 = vpop.permute.xlu0 %67 }
  0x8c   :  { %v1500_v57 = vmul.f32 %v88_v49, %v68_v43  ;;  %v250_v2 = vsel %vm243_vm2, %v1498_v56, -inf }
  0x8d   :  { %v83_v46 = vpop.permute.xlu1 %82  ;;  %v251_v6 = vmax.f32 %v245_v63, %v250_v2 }
  0x8e   :  { %v1502_v58 = vmul.f32 %v88_v49, %v83_v46  ;;  %v248_v3 = vsel %vm243_vm2, %v1500_v57, -inf }
  0x8f   :  { %v78_v47 = vpop.permute.xlu0 %77  ;;  %v249_v7 = vmax.f32 %v244_v61, %v248_v3 }
  0x90   :  { %v1504_v59 = vmul.f32 %v88_v49, %v78_v47  ;;  %v254_v4 = vsel %vm243_vm2, %v1502_v58, -inf  ;;  %v1307_v47 = vmov 0.0  }
  0x91   :  { %v506_v50 = vpop.permute.xlu1 %505  ;;  %v255_v8 = vmax.f32 %v247_v62, %v254_v4  ;;  %v256_v13 = vmax.f32 %v249_v7, %v251_v6  ;;  %1134 = vmatprep.mubr.msk.f32.mxu1 %vm1306_vm3, %v1307_v47  ;;  %1170 = vmatprep.subr.mxu0 %v1307_v47  ;;  %v233_v6 = vsub.s32 1, %v1481_v44 }
  0x92   :  { %v252_v5 = vsel %vm243_vm2, %v1504_v59, -inf  ;;  %v1528_v19 = vmul.f32 %v541_v15, %v506_v50  ;;  %1172 = vmatprep.mubr.msk.f32.mxu0 %vm1306_vm3, %v1307_v47 }
  0x93   :  { %v501_v51 = vpop.permute.xlu0 %500  ;;  %v253_v9 = vmax.f32 %v246_v60, %v252_v5 }
  0x94   :  { %v1530_v20 = vmul.f32 %v541_v15, %v501_v51  ;;  %v695_v28 = vsel %vm243_vm2, %v1528_v19, -inf }
  0x95   :  { %v516_v0 = vpop.permute.xlu1 %515  ;;  %v257_v14 = vmax.f32 %v253_v9, %v255_v8 }
  0x96   :  { %v1532_v21 = vmul.f32 %v541_v15, %v516_v0  ;;  %v694_v29 = vsel %vm243_vm2, %v1530_v20, -inf }
  0x97   :  { %v511_v1 = vpop.permute.xlu0 %510  ;;  %v258_v16 = vmax.f32 %v256_v13, %v257_v14 }
  0x98   :  { %v1534_v22 = vmul.f32 %v541_v15, %v511_v1  ;;  %v697_v30 = vsel %vm243_vm2, %v1532_v21, -inf }
  0x99   :  { %v526_v11 = vpop.permute.xlu1 %525  ;;  %v259_v27 = vrot.slane %v258_v16, 4 }
  0x9a   :  { %v1536_v23 = vmul.f32 %v541_v15, %v526_v11  ;;  %v696_v31 = vsel %vm243_vm2, %v1534_v22, -inf }
  0x9b   :  { %v521_v12 = vpop.permute.xlu0 %520  ;;  %v260_v37 = vmax.f32 %v258_v16, %v259_v27 }
  0x9c   :  { %v1538_v24 = vmul.f32 %v541_v15, %v521_v12  ;;  %v700_v32 = vsel %vm243_vm2, %v1536_v23, -inf }
  0x9d   :  { %v536_v17 = vpop.permute.xlu1 %535  ;;  %v701_v39 = vmax.f32 %v695_v28, %v700_v32  ;;  %v261_v43 = vrot.slane %v260_v37, 2 }
  0x9e   :  { %v1540_v25 = vmul.f32 %v541_v15, %v536_v17  ;;  %v698_v33 = vsel %vm243_vm2, %v1538_v24, -inf }
  0x9f   :  { %v531_v18 = vpop.permute.xlu0 %530  ;;  %v699_v40 = vmax.f32 %v694_v29, %v698_v33  ;;  %v262_v49 = vmax.f32 %v260_v37, %v261_v43 }
  0xa0   :  { %v1542_v26 = vmul.f32 %v541_v15, %v531_v18  ;;  %v704_v34 = vsel %vm243_vm2, %v1540_v25, -inf }
  0xa1   :  { %v705_v41 = vmax.f32 %v697_v30, %v704_v34  ;;  %v706_v45 = vmax.f32 %v699_v40, %v701_v39  ;;  %v263_v51 = vrot.slane %v262_v49, 1 }
  0xa2   :  { %v702_v36 = vsel %vm243_vm2, %v1542_v26, -inf }
  0xa3   :  { %v703_v42 = vmax.f32 %v696_v31, %v702_v36  ;;  %v1566_v61 = vmax.f32 %v262_v49, %v263_v51 }
  0xa5   :  { %v707_v46 = vmax.f32 %v703_v42, %v705_v41  ;;  %v265_v63 = vsub.f32 %v1492_v53, %v1566_v61  ;;  %v266_v0 = vsub.f32 %v1496_v55, %v1566_v61  ;;  %v267_v3 = vsub.f32 %v1490_v52, %v1566_v61 }
  0xa6   :  { %v268_v7 = vsub.f32 %v1494_v54, %v1566_v61  ;;  %v269_v9 = vsub.f32 %v1500_v57, %v1566_v61  ;;  %v270_v55 = vsub.f32 %v1498_v56, %v1566_v61  ;;  %v234_v52 = vrot.slane %v1487_v48, %v233_v6 }
  0xa7   :  { %v708_v50 = vmax.f32 %v706_v45, %v707_v46  ;;  %v273_v2 = vmul.f32 1.442695, %v265_v63  ;;  %v275_v4 = vmul.f32 1.442695, %v266_v0  ;;  %v277_v11 = vmul.f32 1.442695, %v267_v3 }
  0xa8   :  { %v279_v13 = vmul.f32 1.442695, %v268_v7  ;;  %v281_v15 = vmul.f32 1.442695, %v269_v9  ;;  %v283_v16 = vmul.f32 1.442695, %v270_v55  ;;  %v271_v48 = vsub.f32 %v1504_v59, %v1566_v61 }
  0xa9   :  { %v709_v60 = vrot.slane %v708_v50, 4  ;;  %1207 = vpow2.f32 %v273_v2  ;;  %v272_v46 = vsub.f32 %v1502_v58, %v1566_v61 }
  0xaa   :  { %1209 = vpow2.f32 %v275_v4  ;;  %v285_v49 = vmul.f32 1.442695, %v271_v48 }
  0xab   :  { %v710_v62 = vmax.f32 %v708_v50, %v709_v60  ;;  %1211 = vpow2.f32 %v277_v11 }
  0xac   :  { %1213 = vpow2.f32 %v279_v13 }
  0xad   :  { %v711_v1 = vrot.slane %v710_v62, 2  ;;  %1215 = vpow2.f32 %v281_v15 }
  0xae   :  { %1217 = vpow2.f32 %v283_v16 }
  0xaf   :  { %v712_v5 = vmax.f32 %v710_v62, %v711_v1  ;;  %1219 = vpow2.f32 %v285_v49 }
  0xb1   :  { %v713_v12 = vrot.slane %v712_v5, 1 }
  0xb3   :  { %v1584_v17 = vmax.f32 %v712_v5, %v713_v12  ;;  %v1596_v30 = vpop.eup %1207 }
  0xb4   :  { %v1606_v36 = vpop.eup %1209  ;;  %v289_v50 = vsel %vm243_vm2, %v1596_v30, 0.0 }
  0xb5   :  { %v715_v31 = vsub.f32 %v1530_v20, %v1584_v17  ;;  %v716_v41 = vsub.f32 %v1528_v19, %v1584_v17  ;;  %v290_v60 = vsel %vm243_vm2, %v1606_v36, 0.0  ;;  %v1630_v0 = vpop.eup %1211 }
  0xb6   :  { %v291_v9 = vadd.f32 %v290_v60, %v289_v50  ;;  %v292_v11 = vsel %vm243_vm2, %v1630_v0, 0.0 }
  0xb7   :  { %v723_v1 = vmul.f32 1.442695, %v715_v31  ;;  %v725_v4 = vmul.f32 1.442695, %v716_v41 }
  0xb9   :  { %1221 = vpow2.f32 %v723_v1 }
  0xba   :  { %1223 = vpow2.f32 %v725_v4 }
  0xd7   :  { %v1108_v8 = vpop.f32.mrb[0].mxu0 }
  0xd8   :  { %v192_v53 = vpop.f32.mrb[1].mxu0  ;;  %v1586_v57 = vmul.f32 %v1108_v8, %v234_v52  ;;  %v1636_v8 = vpop.eup %1213 }
  0xd9   :  { %v1588_v18 = vmul.f32 %v234_v52, %v192_v53  ;;  %v717_v53 = vsub.f32 %v1534_v22, %v1584_v17  ;;  %v1640_v55 = vpop.eup %1215  ;;  %v293_v22 = vadd.f32 %v292_v11, %v291_v9  ;;  %v294_v48 = vsel %vm243_vm2, %v1636_v8, 0.0 }
  0xda   :  { %v320_v32 = vsel %vm243_vm2, %v1586_v57, -inf  ;;  %v1647_v13 = vpop.eup %1217  ;;  %v721_v9 = vsub.f32 %v1542_v26, %v1584_v17 }
  0xdb   :  { %v1111_v14 = vpop.f32.mrb[2].mxu0  ;;  %v319_v59 = vsel %vm243_vm2, %v1588_v18, -inf  ;;  %v1679_v1 = vpop.eup %1219 }
  0xdc   :  { %v202_v54 = vpop.f32.mrb[3].mxu0  ;;  %v1602_v33 = vmul.f32 %v1111_v14, %v234_v52  ;;  %v287_v14 = vmul.f32 1.442695, %v272_v46 }
  0xdd   :  { %v1610_v37 = vmul.f32 %v234_v52, %v202_v54 }
  0xde   :  { %v322_v62 = vsel %vm243_vm2, %v1602_v33, -inf  ;;  %1225 = vpow2.f32 %v287_v14 }
  0xdf   :  { %v1114_v56 = vpop.f32.mrb[4].mxu0  ;;  %v321_v58 = vsel %vm243_vm2, %v1610_v37, -inf }
  0xe0   :  { %v1590_v27 = vmul.f32 %v1114_v56, %v234_v52  ;;  %v212_v28 = vpop.f32.mrb[5].mxu0  ;;  %v718_v56 = vsub.f32 %v1532_v21, %v1584_v17  ;;  %v719_v21 = vsub.f32 %v1538_v24, %v1584_v17 }
  0xe1   :  { %v1594_v29 = vmul.f32 %v234_v52, %v212_v28  ;;  %v727_v28 = vmul.f32 1.442695, %v717_v53 }
  0xe2   :  { %v325_v34 = vsel %vm243_vm2, %v1590_v27, -inf  ;;  %v729_v41 = vmul.f32 1.442695, %v718_v56  ;;  %v731_v53 = vmul.f32 1.442695, %v719_v21 }
  0xe3   :  { %v326_v39 = vmax.f32 %v320_v32, %v325_v34  ;;  %v323_v40 = vsel %vm243_vm2, %v1594_v29, -inf  ;;  %v1117_v20 = vpop.f32.mrb[6].mxu0  ;;  %v298_v34 = vsel %vm243_vm2, %v1647_v13, 0.0  ;;  %1227 = vpow2.f32 %v727_v28 }
  0xe4   :  { %v324_v42 = vmax.f32 %v319_v59, %v323_v40  ;;  %v1616_v43 = vmul.f32 %v1117_v20, %v234_v52  ;;  %v222_v45 = vpop.f32.mrb[7].mxu0  ;;  %v295_v20 = vadd.f32 %v294_v48, %v293_v22  ;;  %1229 = vpow2.f32 %v729_v41 }
  0xe5   :  { %v1622_v51 = vmul.f32 %v234_v52, %v222_v45  ;;  %v685_v52 = vrot.slane %v1525_v10, %v233_v6  ;;  %v296_v10 = vsel %vm243_vm2, %v1640_v55, 0.0  ;;  %1231 = vpow2.f32 %v731_v53 }
  0xe6   :  { %v331_v19 = vmax.f32 %v324_v42, %v326_v39  ;;  %v329_v63 = vsel %vm243_vm2, %v1616_v43, -inf }
  0xe7   :  { %v330_v61 = vmax.f32 %v322_v62, %v329_v63  ;;  %v327_v2 = vsel %vm243_vm2, %v1622_v51, -inf  ;;  %v1141_v3 = vpop.f32.mrb[8].mxu0 }
  0xe8   :  { %v328_v5 = vmax.f32 %v321_v58, %v327_v2  ;;  %v643_v7 = vpop.f32.mrb[9].mxu0  ;;  %v1653_v44 = vmul.f32 %v1141_v3, %v685_v52  ;;  %v720_v58 = vsub.f32 %v1536_v23, %v1584_v17 }
  0xe9   :  { %v1657_v6 = vmul.f32 %v685_v52, %v643_v7  ;;  %v297_v7 = vadd.f32 %v296_v10, %v295_v20 }
  0xea   :  { %v332_v12 = vmax.f32 %v328_v5, %v330_v61  ;;  %v770_v46 = vsel %vm243_vm2, %v1653_v44, -inf  ;;  %v1685_v5 = vpop.eup %1221  ;;  %v733_v56 = vmul.f32 1.442695, %v720_v58 }
  0xeb   :  { %v1144_v15 = vpop.f32.mrb[10].mxu0  ;;  %v769_v24 = vsel %vm243_vm2, %v1657_v6, -inf  ;;  %v299_v10 = vadd.f32 %v298_v34, %v297_v7 }
  0xec   :  { %v333_v54 = vmax.f32 %v331_v19, %v332_v12  ;;  %v653_v16 = vpop.f32.mrb[11].mxu0  ;;  %v1669_v49 = vmul.f32 %v1144_v15, %v685_v52  ;;  %v1691_v12 = vpop.eup %1223  ;;  %1233 = vpow2.f32 %v733_v56 }
  0xed   :  { %v1675_v60 = vmul.f32 %v685_v52, %v653_v16  ;;  %v740_v21 = vsel %vm243_vm2, %v1691_v12, 0.0 }
  0xee   :  { %v334_v31 = vrot.slane %v333_v54, 4  ;;  %v772_v23 = vsel %vm243_vm2, %v1669_v49, -inf }
  0xef   :  { %v1147_v32 = vpop.f32.mrb[12].mxu0  ;;  %v771_v16 = vsel %vm243_vm2, %v1675_v60, -inf }
  0xf0   :  { %v335_v59 = vmax.f32 %v333_v54, %v334_v31  ;;  %v1663_v39 = vmul.f32 %v1147_v32, %v685_v52  ;;  %v663_v40 = vpop.f32.mrb[13].mxu0  ;;  %v1703_v31 = vpop.eup %1225  ;;  %v739_v32 = vsel %vm243_vm2, %v1685_v5, 0.0 }
  0xf1   :  { %v1665_v42 = vmul.f32 %v685_v52, %v663_v40 }
  0xf2   :  { %v336_v45 = vrot.slane %v335_v59, 2  ;;  %v775_v50 = vsel %vm243_vm2, %v1663_v39, -inf }
  0xf3   :  { %v776_v62 = vmax.f32 %v770_v46, %v775_v50  ;;  %v773_v19 = vsel %vm243_vm2, %v1665_v42, -inf  ;;  %v1150_v63 = vpop.f32.mrb[14].mxu0 }
  0xf4   :  { %v337_v61 = vmax.f32 %v335_v59, %v336_v45  ;;  %v774_v2 = vmax.f32 %v769_v24, %v773_v19  ;;  %v1683_v3 = vmul.f32 %v1150_v63, %v685_v52  ;;  %v673_v4 = vpop.f32.mrb[15].mxu0  ;;  %v1713_v45 = vpop.eup %1227 }
  0xf5   :  { %v1689_v11 = vmul.f32 %v685_v52, %v673_v4  ;;  %v300_v52 = vsel %vm243_vm2, %v1679_v1, 0.0  ;;  %v1725_v4 = vpop.eup %1229 }
  0xf6   :  { %v338_v14 = vrot.slane %v337_v61, 1  ;;  %v781_v15 = vmax.f32 %v774_v2, %v776_v62  ;;  %v779_v54 = vsel %vm243_vm2, %v1683_v3, -inf  ;;  %v301_v58 = vadd.f32 %v300_v52, %v299_v10 }
  0xf7   :  { %v780_v22 = vmax.f32 %v772_v23, %v779_v54  ;;  %v777_v26 = vsel %vm243_vm2, %v1689_v11, -inf }
  0xf8   :  { %v339_v28 = vmax.f32 %v337_v61, %v338_v14  ;;  %v778_v48 = vmax.f32 %v771_v16, %v777_v26  ;;  %v741_v61 = vadd.f32 %v740_v21, %v739_v32  ;;  %v1727_v14 = vpop.eup %1231 }
  0xf9   :  { %v1731_v52 = vpop.eup %1233 }
  0xfa   :  { %v340_v59 = vsub.f32 %v1588_v18, %v339_v28  ;;  %v341_v40 = vsub.f32 %v1586_v57, %v339_v28  ;;  %v342_v20 = vsub.f32 %v1610_v37, %v339_v28  ;;  %v343_v41 = vsub.f32 %v1602_v33, %v339_v28 }
  0xfb   :  { %v344_v46 = vsub.f32 %v1594_v29, %v339_v28  ;;  %v345_v34 = vsub.f32 %v1590_v27, %v339_v28  ;;  %v346_v50 = vsub.f32 %v1622_v51, %v339_v28  ;;  %v347_v24 = vsub.f32 %v1616_v43, %v339_v28 }
  0xfc   :  { %v348_v62 = vmul.f32 1.442695, %v340_v59  ;;  %v350_v19 = vmul.f32 1.442695, %v341_v40  ;;  %v352_v63 = vmul.f32 1.442695, %v342_v20  ;;  %v782_v18 = vmax.f32 %v778_v48, %v780_v22 }
  0xfd   :  { %v722_v57 = vsub.f32 %v1540_v25, %v1584_v17  ;;  %v354_v33 = vmul.f32 1.442695, %v343_v41  ;;  %v302_v37 = vsel %vm243_vm2, %v1703_v31, 0.0  ;;  %v735_v29 = vmul.f32 1.442695, %v721_v9 }
  0xfe   :  { %1235 = vpow2.f32 %v348_v62  ;;  %v783_v27 = vmax.f32 %v781_v15, %v782_v18  ;;  %v356_v51 = vmul.f32 1.442695, %v344_v46  ;;  %v742_v43 = vsel %vm243_vm2, %v1713_v45, 0.0 }
  0xff   :  { %1237 = vpow2.f32 %v350_v19  ;;  %v303_v7 = vadd.f32 %v302_v37, %v301_v58  ;;  %v358_v25 = vmul.f32 1.442695, %v345_v34  ;;  %v737_v17 = vmul.f32 1.442695, %v722_v57 }
 0x100   :  { %1239 = vpow2.f32 %v352_v63  ;;  %v784_v2 = vrot.slane %v783_v27, 4  ;;  %v743_v9 = vadd.f32 %v742_v43, %v741_v61  ;;  %v360_v23 = vmul.f32 1.442695, %v346_v50 }
 0x101   :  { %1241 = vpow2.f32 %v354_v33  ;;  %v744_v15 = vsel %vm243_vm2, %v1725_v4, 0.0  ;;  %v304_v16 = vrot.slane %v303_v7, 4  ;;  %v362_v22 = vmul.f32 1.442695, %v347_v24 }
 0x102   :  { %1243 = vpow2.f32 %v735_v29  ;;  %v785_v53 = vmax.f32 %v783_v27, %v784_v2  ;;  %v745_v56 = vadd.f32 %v744_v15, %v743_v9  ;;  %v746_v48 = vsel %vm243_vm2, %v1727_v14, 0.0 }
 0x103   :  { %1245 = vpow2.f32 %v356_v51  ;;  %v305_v21 = vadd.f32 %v304_v16, %v303_v7  ;;  %v748_v50 = vsel %vm243_vm2, %v1731_v52, 0.0 }
 0x104   :  { %v786_v54 = vrot.slane %v785_v53, 2  ;;  %1247 = vpow2.f32 %v358_v25  ;;  %v747_v34 = vadd.f32 %v746_v48, %v745_v56 }
 0x105   :  { %1249 = vpow2.f32 %v737_v17  ;;  %v306_v33 = vrot.slane %v305_v21, 2 }
 0x106   :  { %v787_v26 = vmax.f32 %v785_v53, %v786_v54  ;;  %1251 = vpow2.f32 %v360_v23 }
 0x107   :  { %1253 = vpow2.f32 %v362_v22  ;;  %v307_v54 = vadd.f32 %v306_v33, %v305_v21 }
 0x108   :  { %v1733_v28 = vpop.eup %1235  ;;  %v788_v10 = vrot.slane %v787_v26, 1 }
 0x109   :  { %v1737_v32 = vpop.eup %1237  ;;  %v364_v59 = vsel %vm243_vm2, %v1733_v28, 0.0  ;;  %v308_v21 = vrot.slane %v307_v54, 1 }
 0x10a   :  { %v1741_v40 = vpop.eup %1239  ;;  %v365_v20 = vsel %vm243_vm2, %v1737_v32, 0.0  ;;  %v789_v41 = vmax.f32 %v787_v26, %v788_v10 }
 0x10b   :  { %v1745_v46 = vpop.eup %1241  ;;  %v366_v24 = vadd.f32 %v365_v20, %v364_v59  ;;  %v367_v19 = vsel %vm243_vm2, %v1741_v40, 0.0  ;;  %v309_v33 = vadd.f32 %v308_v21, %v307_v54 }
 0x10c   :  { %v1749_v62 = vpop.eup %1243  ;;  %v790_v63 = vsub.f32 %v1657_v6, %v789_v41  ;;  %v791_v18 = vsub.f32 %v1653_v44, %v789_v41  ;;  %v792_v58 = vsub.f32 %v1675_v60, %v789_v41  ;;  %v793_v29 = vsub.f32 %v1669_v49, %v789_v41 }
 0x10d   :  { %v1756_v57 = vpop.eup %1245  ;;  %v368_v37 = vadd.f32 %v367_v19, %v366_v24  ;;  %v794_v27 = vsub.f32 %v1665_v42, %v789_v41  ;;  %v369_v61 = vsel %vm243_vm2, %v1745_v46, 0.0  ;;  %v795_v51 = vsub.f32 %v1663_v39, %v789_v41 }
 0x10e   :  { %v796_v43 = vsub.f32 %v1689_v11, %v789_v41  ;;  %v797_v6 = vsub.f32 %v1683_v3, %v789_v41  ;;  %v1765_v44 = vpop.eup %1247  ;;  %v749_v60 = vadd.f32 %v748_v50, %v747_v34  ;;  %v798_v7 = vmul.f32 1.442695, %v790_v63 }
 0x10f   :  { %v370_v2 = vadd.f32 %v369_v61, %v368_v37  ;;  %v800_v25 = vmul.f32 1.442695, %v791_v18  ;;  %v1767_v17 = vpop.eup %1249  ;;  %v750_v42 = vsel %vm243_vm2, %v1749_v62, 0.0  ;;  %v371_v49 = vsel %vm243_vm2, %v1756_v57, 0.0 }
 0x110   :  { %v802_v53 = vmul.f32 1.442695, %v792_v58  ;;  %v804_v39 = vmul.f32 1.442695, %v793_v29  ;;  %v1773_v9 = vpop.eup %1251  ;;  %1255 = vpow2.f32 %v798_v7  ;;  %v373_v3 = vsel %vm243_vm2, %v1765_v44, 0.0 }
 0x111   :  { %v372_v11 = vadd.f32 %v371_v49, %v370_v2  ;;  %1257 = vpow2.f32 %v800_v25  ;;  %v806_v23 = vmul.f32 1.442695, %v794_v27  ;;  %v1777_v15 = vpop.eup %1253  ;;  %v751_v16 = vadd.f32 %v750_v42, %v749_v60 }
 0x112   :  { %1259 = vpow2.f32 %v802_v53  ;;  %v752_v26 = vsel %vm243_vm2, %v1767_v17, 0.0  ;;  %v375_v56 = vsel %vm243_vm2, %v1773_v9, 0.0  ;;  %v808_v48 = vmul.f32 1.442695, %v795_v51 }
 0x113   :  { %v374_v22 = vadd.f32 %v373_v3, %v372_v11  ;;  %1261 = vpow2.f32 %v804_v39  ;;  %v377_v59 = vsel %vm243_vm2, %v1777_v15, 0.0  ;;  %v810_v20 = vmul.f32 1.442695, %v796_v43 }
 0x114   :  { %1263 = vpow2.f32 %v806_v23  ;;  %v753_v41 = vadd.f32 %v752_v26, %v751_v16  ;;  %v812_v50 = vmul.f32 1.442695, %v797_v6 }
 0x115   :  { %v376_v10 = vadd.f32 %v375_v56, %v374_v22  ;;  %1265 = vpow2.f32 %v808_v48 }
 0x116   :  { %1267 = vpow2.f32 %v810_v20  ;;  %v754_v63 = vrot.slane %v753_v41, 4 }
 0x117   :  { %v378_v34 = vadd.f32 %v377_v59, %v376_v10  ;;  %1269 = vpow2.f32 %v812_v50 }
 0x118   :  { %v755_v6 = vadd.f32 %v754_v63, %v753_v41  ;;  %1271 = vrcp.f32 %v309_v33 }
 0x119   :  { %v379_v24 = vrot.slane %v378_v34, 4 }
 0x11a   :  { %v1785_v19 = vpop.eup %1255  ;;  %v756_v11 = vrot.slane %v755_v6, 2 }
 0x11b   :  { %v380_v18 = vadd.f32 %v379_v24, %v378_v34  ;;  %v1787_v58 = vpop.eup %1257  ;;  %v814_v37 = vsel %vm243_vm2, %v1785_v19, 0.0 }
 0x11c   :  { %v1791_v29 = vpop.eup %1259  ;;  %v815_v61 = vsel %vm243_vm2, %v1787_v58, 0.0  ;;  %v757_v48 = vadd.f32 %v756_v11, %v755_v6 }
 0x11d   :  { %v381_v27 = vrot.slane %v380_v18, 2  ;;  %v1795_v51 = vpop.eup %1261  ;;  %v816_v43 = vadd.f32 %v815_v61, %v814_v37  ;;  %v817_v2 = vsel %vm243_vm2, %v1791_v29, 0.0 }
 0x11e   :  { %v1799_v7 = vpop.eup %1263  ;;  %v819_v49 = vsel %vm243_vm2, %v1795_v51, 0.0  ;;  %v758_v21 = vrot.slane %v757_v48, 1 }
 0x11f   :  { %v382_v60 = vadd.f32 %v381_v27, %v380_v18  ;;  %v818_v25 = vadd.f32 %v817_v2, %v816_v43  ;;  %v1803_v53 = vpop.eup %1265  ;;  %v821_v23 = vsel %vm243_vm2, %v1799_v7, 0.0 }
 0x120   :  { %v1807_v54 = vpop.eup %1267  ;;  %v823_v22 = vsel %vm243_vm2, %v1803_v53, 0.0  ;;  %v759_v43 = vadd.f32 %v758_v21, %v757_v48 }
 0x121   :  { %v383_v42 = vrot.slane %v382_v60, 1  ;;  %v820_v39 = vadd.f32 %v819_v49, %v818_v25  ;;  %v1811_v26 = vpop.eup %1269  ;;  %v825_v10 = vsel %vm243_vm2, %v1807_v54, 0.0 }
 0x122   :  { %v827_v20 = vsel %vm243_vm2, %v1811_v26, 0.0  ;;  %v1272_v41 = vpop.eup %1271 }
 0x123   :  { %v384_v3 = vadd.f32 %v383_v42, %v382_v60  ;;  %v822_v16 = vadd.f32 %v821_v23, %v820_v39  ;;  %v311_v24 = vmul.f32 %v1272_v41, %v1596_v30  ;;  %v312_v63 = vmul.f32 %v1272_v41, %v1606_v36 }
 0x124   :  { %v313_v33 = vmul.f32 %v1272_v41, %v1630_v0  ;;  %v314_v37 = vmul.f32 %v1272_v41, %v1636_v8  ;;  %v315_v27 = vmul.f32 %v1272_v41, %v1640_v55  ;;  %v316_v6 = vmul.f32 %v1272_v41, %v1647_v13 }
 0x125   :  { %1273 = vrcp.f32 %v384_v3  ;;  %v824_v56 = vadd.f32 %v823_v22, %v822_v16  ;;  %v317_v60 = vmul.f32 %v1272_v41, %v1679_v1  ;;  %v318_v2 = vmul.f32 %v1272_v41, %v1703_v31 }
 0x126   :  { %1275 = vrcp.f32 %v759_v43 }
 0x127   :  { %v826_v59 = vadd.f32 %v825_v10, %v824_v56 }
 0x129   :  { %v828_v34 = vadd.f32 %v827_v20, %v826_v59 }
 0x12b   :  { %v829_v50 = vrot.slane %v828_v34, 4 }
 0x12d   :  { %v830_v18 = vadd.f32 %v829_v50, %v828_v34 }
 0x12f   :  { %v1274_v61 = vpop.eup %1273  ;;  %v831_v25 = vrot.slane %v830_v18, 2 }
 0x130   :  { %v386_v30 = vmul.f32 %v1274_v61, %v1733_v28  ;;  %v387_v36 = vmul.f32 %v1274_v61, %v1737_v32  ;;  %v388_v42 = vmul.f32 %v1274_v61, %v1741_v40  ;;  %v389_v0 = vmul.f32 %v1274_v61, %v1745_v46 }
 0x131   :  { %v390_v8 = vmul.f32 %v1274_v61, %v1756_v57  ;;  %v391_v55 = vmul.f32 %v1274_v61, %v1765_v44  ;;  %v392_v49 = vmul.f32 %v1274_v61, %v1773_v9  ;;  %v832_v13 = vadd.f32 %v831_v25, %v830_v18  ;;  %v1276_v9 = vpop.eup %1275 }
 0x132   :  { %v394_v39 = vadd.f32 %v386_v30, %v311_v24  ;;  %v395_v1 = vadd.f32 %v387_v36, %v312_v63  ;;  %v396_v11 = vadd.f32 %v388_v42, %v313_v33  ;;  %v397_v31 = vadd.f32 %v389_v0, %v314_v37 }
 0x133   :  { %v398_v3 = vadd.f32 %v390_v8, %v315_v27  ;;  %v399_v23 = vadd.f32 %v391_v55, %v316_v6  ;;  %v393_v28 = vmul.f32 %v1274_v61, %v1777_v15  ;;  %v833_v32 = vrot.slane %v832_v13, 1 }
 0x134   :  { %v1176_v40 = vpack.c.bf16 %v395_v1, %v394_v39  ;;  %v400_v16 = vadd.f32 %v392_v49, %v317_v60  ;;  %v1179_v46 = vpack.c.bf16 %v397_v31, %v396_v11  ;;  %v761_v15 = vmul.f32 %v1276_v9, %v1685_v5  ;;  %v934_v60 = vld [vmem:[%s1884_s5] sm:$0xff] }
 0x135   :  { %v1182_v22 = vpack.c.bf16 %v399_v23, %v398_v3  ;;  %v401_v57 = vadd.f32 %v393_v28, %v318_v2  ;;  %v834_v56 = vadd.f32 %v833_v32, %v832_v13  ;;  %v762_v48 = vmul.f32 %v1276_v9, %v1691_v12 }
 0x136   :  { %1177 = vmatpush3.bf16.msra.mxu1 %v1176_v40  ;;  %v763_v10 = vmul.f32 %v1276_v9, %v1713_v45  ;;  %v764_v59 = vmul.f32 %v1276_v9, %v1725_v4  ;;  %v765_v41 = vmul.f32 %v1276_v9, %v1727_v14  ;;  %v766_v34 = vmul.f32 %v1276_v9, %v1731_v52 }
 0x137   :  { %1178 = vmatprep.subr.bf16.mxu1 %v1305_v38  ;;  %v1185_v44 = vpack.c.bf16 %v401_v57, %v400_v16  ;;  %1277 = vrcp.f32 %v834_v56  ;;  %v767_v21 = vmul.f32 %v1276_v9, %v1749_v62  ;;  %v768_v50 = vmul.f32 %v1276_v9, %v1767_v17 }
 0x138   :  { %v1018_v42 = vmul.f32 2.0, %v1474_v35 }
 0x13a   :  { %1180 = vmatpush3.bf16.msra.mxu1 %v1179_v46 }
 0x13b   :  { %1181 = vmatprep.subr.bf16.mxu1 %v1305_v38 }
 0x13e   :  { %1183 = vmatpush3.bf16.msra.mxu1 %v1182_v22 }
 0x13f   :  { %1184 = vmatprep.subr.bf16.mxu1 %v1305_v38 }
 0x141   :  { %v1278_v20 = vpop.eup %1277 }
 0x142   :  { %1186 = vmatpush3.bf16.msra.mxu1 %v1185_v44  ;;  %v836_v5 = vmul.f32 %v1278_v20, %v1785_v19  ;;  %v837_v12 = vmul.f32 %v1278_v20, %v1787_v58  ;;  %v838_v45 = vmul.f32 %v1278_v20, %v1791_v29  ;;  %v839_v4 = vmul.f32 %v1278_v20, %v1795_v51 }
 0x143   :  { %1187 = vmatprep.subr.bf16.mxu1 %v1305_v38  ;;  %v840_v24 = vmul.f32 %v1278_v20, %v1799_v7  ;;  %v841_v14 = vmul.f32 %v1278_v20, %v1803_v53  ;;  %v842_v52 = vmul.f32 %v1278_v20, %v1807_v54  ;;  %v843_v62 = vmul.f32 %v1278_v20, %v1811_v26  ;;  %v855_v26 = vpop.permute.xlu0 %854 }
 0x144   :  { %v844_v17 = vadd.f32 %v836_v5, %v761_v15  ;;  %v845_v63 = vadd.f32 %v837_v12, %v762_v48  ;;  %v846_v19 = vadd.f32 %v838_v45, %v763_v10  ;;  %v847_v18 = vadd.f32 %v839_v4, %v764_v59 }
 0x145   :  { %1135 = vmatmul.mubr.msk.f32.vlgmr.msra.gmra.mrb[0].mxu1 %vm243_vm2, %v1474_v35  ;;  %v848_v58 = vadd.f32 %v840_v24, %v765_v41  ;;  %v849_v33 = vadd.f32 %v841_v14, %v766_v34  ;;  %v850_v29 = vadd.f32 %v842_v52, %v767_v21  ;;  %v851_v37 = vadd.f32 %v843_v62, %v768_v50 }
 0x146   :  { %1167 = vmatprep.mubr.msk.f32.mxu1 %vm1306_vm3, %v1307_v47  ;;  %v1188_v51 = vpack.c.bf16 %v845_v63, %v844_v17  ;;  %v1191_v7 = vpack.c.bf16 %v847_v18, %v846_v19 }
 0x147   :  { %v1194_v53 = vpack.c.bf16 %v849_v33, %v848_v58  ;;  %v1197_v54 = vpack.c.bf16 %v851_v37, %v850_v29  ;;  %v940_v2 = vpop.permute.xlu0 %939 }
 0x148   :  { %1189 = vmatpush3.bf16.msra.mxu1 %v1188_v51 }
 0x149   :  { %1190 = vmatprep.subr.bf16.mxu1 %v1305_v38 }
 0x14c   :  { %1192 = vmatpush3.bf16.msra.mxu1 %v1191_v7 }
 0x14d   :  { %1193 = vmatprep.subr.bf16.mxu1 %v1305_v38 }
 0x150   :  { %1195 = vmatpush3.bf16.msra.mxu1 %v1194_v53 }
 0x151   :  { %1196 = vmatprep.subr.bf16.mxu1 %v1305_v38 }
 0x154   :  { %1198 = vmatpush3.bf16.msra.mxu1 %v1197_v54 }
 0x157   :  { %1168 = vmatmul.mubr.msk.f32.vlgmr.msra.gmra.mrb[2].mxu1 %vm243_vm2, %v855_v26 }
 0x218   :  { %v472_v27 = vpop.f32.mrb[0].mxu1 }
 0x219   :  { %476 = vst.msk [vmem:[#allocation2] sm:$0xff] %vm243_vm2, %v472_v27  ;;  %v1136_v47 = vpop.f32.mrb[1].mxu1 }
 0x22a   :  { %v924_v61 = vpop.f32.mrb[2].mxu1 }
 0x22b   :  { %929 = vrot.lane.b32.xlu1 %v924_v61, %s1304_s23  ;;  %v1169_v43 = vpop.f32.mrb[3].mxu1 }
 0x29d   :  { %v930_v6 = vpop.permute.xlu1 %929 }
 0x29e   :  { %933 = vst.msk [vmem:[#allocation2] sm:$0xff] %vm932_vm4, %v930_v6 }
 0x2a5   :  { %v935_v38 = vld [vmem:[#allocation2] sm:$0xff] }
 0x2a6   :  { %1171 = vmatpush3.msra.mxu0 %v935_v38 }
 0x2a7   :  { %1173 = vmatmul.mubr.msk.f32.vlgmr.msra.gmra.mrb[16].mxu0 %vm942_vm5, %v934_v60 }
 0x37a   :  { %v1012_v25 = vpop.f32.mrb[16].mxu0 }
 0x37b   :  { %v1013_v30 = vadd.f32 %v1012_v25, %v940_v2  ;;  %v1174_v36 = vpop.f32.mrb[17].mxu0 }
 0x37d   :  { %v1016_v0 = vmax.f32 %v1013_v30, 0.0 }
 0x37f   :  { %v1019_v8 = vadd.f32 %v1018_v42, %v1016_v0 }
 0x381   :  { %1020 = vst [vmem:[#allocation3] sm:$0xff] %v1019_v8 }
 0x382   :  { %1290 = shalt.err (!%p1287_p4)
}
 0x383   :  { %s1291_s30 = scalar_lea.hbm %s1886_s7, 128 }
 0x384   :  { %p1292_p5 = scmp.ne.s32.totalorder %s1886_s7, %s1291_s30  ;;  %p1295_p6 = scmp.lt.u32.totalorder %s1291_s30, %s1886_s7 }
 0x386   :  { %p1297_p7 = pnand %p1295_p6, %p1292_p5 }
 0x388   :  { %1300 = shalt.err (!%p1297_p7)
}
 0x389   :  { %1030 = dma.vmem_to_hbm [thread:$0]  %s1028_s28, 128, %s1886_s7, [#allocation4]  }
 0x38a   :  { %1301 = dma.done.wait [#allocation4], 128  }
 0x38b   :  { %1302 = vsyncadd [#allocation4], 4294967168 }
 0x38c   :  { %1034 = vsyncpa [#allocation4], 1 }

</bundles_post_ra>
